<compile_context>
chip_gen: v7x
topology: tpu7x:2x2x1
jax: 0.10.0
libtpu: 0.0.40
codegen_flags: <defaults>
</compile_context>

<pallas_src>
import math
from functools import partial

import numpy as np
import jax
import jax.numpy as jnp
from jax.experimental import pallas as pl
from jax.experimental.pallas import tpu as pltpu


def _round_up(x: int, m: int) -> int:
    return ((x + m - 1) // m) * m


def _make_kernel(reps: int):
    def kernel(pos_ref, tab_ref, out_ref):
        # pos_ref: (TB, reps) f32 -- one position per lane group (column).
        # tab_ref: (reps+1, W) f32 -- rows 0..reps-1: group-masked freqs
        #                             (block-diagonal), row reps: phase row.
        # out_ref: (TB, W) f32.
        arg = tab_ref[reps:reps + 1, :]                         # (1, W) phase row
        for g in range(reps):                                   # unrolled broadcast FMAs (VPU)
            arg = arg + pos_ref[:, g:g + 1] * tab_ref[g:g + 1, :]
        out_ref[...] = jnp.sin(arg)                             # single full-width lane-dense store
    return kernel


@partial(jax.jit, static_argnames=("embedding_dim", "tile_bytes"))
def sinusoidal_position_embeddings(position, embedding_dim: int,
                                   tile_bytes: int = 4 * 1024 * 1024):
    """position: (B,), (B,1) or any shape with B elements -> (B, embedding_dim) f32."""
    if embedding_dim % 2 != 0:
        raise ValueError("embedding_dim must be even (sin/cos halves).")
    half = embedding_dim // 2
    if half < 2:
        raise ValueError("embedding_dim must be >= 4 (scale uses half - 1).")

    pos = jnp.asarray(position).reshape(-1).astype(jnp.float32)
    b = pos.shape[0]

    # Lane-packing factor: reps positions per 128-lane row when dim divides 128.
    if embedding_dim <= 128 and 128 % embedding_dim == 0:
        reps = 128 // embedding_dim
    else:
        reps = 1
    w = reps * embedding_dim

    # Constant table (trace-time numpy -> baked as a compile-time constant under jit).
    scale = np.float32(math.log(10000.0) / (half - 1))
    freqs = np.exp(-np.arange(half, dtype=np.float32) * scale)            # (half,)
    fgroup = np.concatenate([freqs, freqs])                               # (dim,)
    pgroup = np.concatenate([np.zeros(half, np.float32),
                             np.full(half, np.pi / 2.0, np.float32)])     # (dim,)
    tab = np.zeros((reps + 1, w), np.float32)
    for g in range(reps):
        tab[g, g * embedding_dim:(g + 1) * embedding_dim] = fgroup
    tab[reps, :] = np.tile(pgroup, reps)

    # Packed rows + byte-targeted, balanced tiling (<= 8 padded rows per step).
    rows = pl.cdiv(b, reps)
    rows8 = _round_up(rows, 8)
    tb_target = max(8, (max(tile_bytes, 4096) // (w * 4)) // 8 * 8)       # ~tile_bytes of output/step
    grid = pl.cdiv(rows8, tb_target)
    if rows8 >= 16:
        grid = max(grid, 2)                       # >= 2 steps so both v7x TensorCores get work
    tb = _round_up(pl.cdiv(rows8, grid), 8)       # balanced tile; grid*tb - rows8 <= 8*grid
    rows_pad = grid * tb

    pos_packed = jnp.pad(pos, (0, rows_pad * reps - b)).reshape(rows_pad, reps)

    out = pl.pallas_call(
        _make_kernel(reps),
        out_shape=jax.ShapeDtypeStruct((rows_pad, w), jnp.float32),
        grid_spec=pltpu.PrefetchScalarGridSpec(
            num_scalar_prefetch=0,
            grid=(grid,),
            in_specs=[
                pl.BlockSpec((tb, reps), lambda i: (i, 0)),          # packed positions
                pl.BlockSpec((reps + 1, w), lambda i: (0, 0)),       # constant freq/phase table
            ],
            out_specs=pl.BlockSpec((tb, w), lambda i: (i, 0)),
        ),
        compiler_params=pltpu.CompilerParams(
            dimension_semantics=("parallel",),        # independent row tiles
            vmem_limit_bytes=32 * 1024 * 1024,        # headroom; tiles are ~4 MiB each
        ),
    )(pos_packed, jnp.asarray(tab))

    # Row-major reshape: packed row r, lane group g == position r*reps + g.
    return out.reshape(rows_pad * reps, embedding_dim)[:b]


def _reference(position, embedding_dim):
    half = embedding_dim // 2
    e = math.log(10000.0) / (half - 1)
    e = jnp.exp(-jnp.arange(half, dtype=jnp.float32) * e)
    e = jnp.asarray(position, jnp.float32).reshape(-1, 1) * e.reshape(1, -1)
    return jnp.concatenate([jnp.sin(e), jnp.cos(e)], axis=-1)


if __name__ == "__main__":
    key = jax.random.PRNGKey(0)
    k1, k2, k3 = jax.random.split(key, 3)

    # Tolerance note: cos evaluated as sin(x + pi/2) plus 1-ulp differences in the
    # host-built frequency table give up to ~1e-4 abs error at |pos*f| ~ 1e3.
    ATOL, RTOL = 2e-4, 1e-5

    # Case 1: canonical module usage -- batch of diffusion timesteps (B, 1), dim=32.
    B, D = 8, 32
    position = jax.random.uniform(k1, (B, 1), jnp.float32, 0.0, 1000.0)
    out = jax.block_until_ready(sinusoidal_position_embeddings(position, D))
    ref = _reference(position, D)
    assert out.shape == (B, D)
    assert jnp.allclose(out, ref, atol=ATOL, rtol=RTOL), "mismatch vs reference (case 1)"

    # Case 2: B not a multiple of 8 nor of the packing factor (pad/slice path).
    position2 = jax.random.uniform(k2, (21,), jnp.float32, 0.0, 1000.0)
    out2 = jax.block_until_ready(sinusoidal_position_embeddings(position2, D))
    ref2 = _reference(position2, D)
    assert out2.shape == (21, D)
    assert jnp.allclose(out2, ref2, atol=ATOL, rtol=RTOL), "mismatch vs reference (case 2)"

    # Case 3: dim = 128 -> no lane packing (reps = 1), multi-step "parallel" grid.
    position3 = jax.random.uniform(k3, (16, 1), jnp.float32, 0.0, 1000.0)
    out3 = jax.block_until_ready(sinusoidal_position_embeddings(position3, 128))
    ref3 = _reference(position3, 128)
    assert out3.shape == (16, 128)
    assert jnp.allclose(out3, ref3, atol=ATOL, rtol=RTOL), "mismatch vs reference (case 3)"

    print("KERNEL_OK")
</pallas_src>

<mosaic_0001>
module attributes {stable_mosaic.version = 11 : i64} {
  func.func @kernel(%arg0: i32, %arg1: memref<8x4xf32, #tpu.memory_space<vmem>>, %arg2: memref<5x128xf32, #tpu.memory_space<vmem>>, %arg3: memref<8x128xf32, #tpu.memory_space<vmem>>) attributes {dimension_semantics = [#tpu.dimension_semantics<parallel>], iteration_bounds = array<i64: 1>, scalar_prefetch = 0 : i64, scratch_operands = 0 : i64, tpu.core_type = #tpu.core_type<tc>, window_params = [{transform_indices = @transform_0, window_bounds = array<i64: 8, 4>}, {pipeline_mode = #tpu.pipeline_mode<synchronous>, transform_indices = @transform_1, window_bounds = array<i64: 5, 128>}, {transform_indices = @transform_2, window_bounds = array<i64: 8, 128>}]} {
    %c4 = arith.constant 4 : index
    %c0 = arith.constant 0 : index
    %0 = vector.load %arg2[%c4, %c0] : memref<5x128xf32, #tpu.memory_space<vmem>>, vector<1x128xf32>
    %c0_0 = arith.constant 0 : index
    %c0_1 = arith.constant 0 : index
    %1 = vector.load %arg1[%c0_0, %c0_1] : memref<8x4xf32, #tpu.memory_space<vmem>>, vector<8x1xf32>
    %c0_2 = arith.constant 0 : index
    %c0_3 = arith.constant 0 : index
    %2 = vector.load %arg2[%c0_2, %c0_3] : memref<5x128xf32, #tpu.memory_space<vmem>>, vector<1x128xf32>
    %3 = vector.broadcast %1 : vector<8x1xf32> to vector<8x128xf32>
    %4 = vector.broadcast %2 : vector<1x128xf32> to vector<8x128xf32>
    %5 = arith.mulf %3, %4 : vector<8x128xf32>
    %6 = vector.broadcast %0 : vector<1x128xf32> to vector<8x128xf32>
    %7 = arith.addf %6, %5 : vector<8x128xf32>
    %c0_4 = arith.constant 0 : index
    %c1 = arith.constant 1 : index
    %8 = vector.load %arg1[%c0_4, %c1] : memref<8x4xf32, #tpu.memory_space<vmem>>, vector<8x1xf32>
    %c1_5 = arith.constant 1 : index
    %c0_6 = arith.constant 0 : index
    %9 = vector.load %arg2[%c1_5, %c0_6] : memref<5x128xf32, #tpu.memory_space<vmem>>, vector<1x128xf32>
    %10 = vector.broadcast %8 : vector<8x1xf32> to vector<8x128xf32>
    %11 = vector.broadcast %9 : vector<1x128xf32> to vector<8x128xf32>
    %12 = arith.mulf %10, %11 : vector<8x128xf32>
    %13 = arith.addf %7, %12 : vector<8x128xf32>
    %c0_7 = arith.constant 0 : index
    %c2 = arith.constant 2 : index
    %14 = vector.load %arg1[%c0_7, %c2] : memref<8x4xf32, #tpu.memory_space<vmem>>, vector<8x1xf32>
    %c2_8 = arith.constant 2 : index
    %c0_9 = arith.constant 0 : index
    %15 = vector.load %arg2[%c2_8, %c0_9] : memref<5x128xf32, #tpu.memory_space<vmem>>, vector<1x128xf32>
    %16 = vector.broadcast %14 : vector<8x1xf32> to vector<8x128xf32>
    %17 = vector.broadcast %15 : vector<1x128xf32> to vector<8x128xf32>
    %18 = arith.mulf %16, %17 : vector<8x128xf32>
    %19 = arith.addf %13, %18 : vector<8x128xf32>
    %c0_10 = arith.constant 0 : index
    %c3 = arith.constant 3 : index
    %20 = vector.load %arg1[%c0_10, %c3] : memref<8x4xf32, #tpu.memory_space<vmem>>, vector<8x1xf32>
    %c3_11 = arith.constant 3 : index
    %c0_12 = arith.constant 0 : index
    %21 = vector.load %arg2[%c3_11, %c0_12] : memref<5x128xf32, #tpu.memory_space<vmem>>, vector<1x128xf32>
    %22 = vector.broadcast %20 : vector<8x1xf32> to vector<8x128xf32>
    %23 = vector.broadcast %21 : vector<1x128xf32> to vector<8x128xf32>
    %24 = arith.mulf %22, %23 : vector<8x128xf32>
    %25 = arith.addf %19, %24 : vector<8x128xf32>
    %26 = math.sin %25 : vector<8x128xf32>
    %c0_13 = arith.constant 0 : index
    %c0_14 = arith.constant 0 : index
    %27 = vector.load %arg3[%c0_13, %c0_14] : memref<8x128xf32, #tpu.memory_space<vmem>>, vector<8x128xf32>
    tpu.vector_store %arg3[%c0_13, %c0_14], %26 {strides = array<i32>} : memref<8x128xf32, #tpu.memory_space<vmem>>, vector<8x128xf32>,
    return
  }
  func.func @transform_0(%arg0: i32) -> (i32, i32) {
    %c0_i32 = arith.constant 0 : i32
    %c0_i32_0 = arith.constant 0 : i32
    return %arg0, %c0_i32 : i32, i32
  }
  func.func @transform_1(%arg0: i32) -> (i32, i32) {
    %c0_i32 = arith.constant 0 : i32
    %c0_i32_0 = arith.constant 0 : i32
    %c0_i32_1 = arith.constant 0 : i32
    return %c0_i32, %c0_i32_0 : i32, i32
  }
  func.func @transform_2(%arg0: i32) -> (i32, i32) {
    %c0_i32 = arith.constant 0 : i32
    %c0_i32_0 = arith.constant 0 : i32
    return %arg0, %c0_i32 : i32, i32
  }
}

</mosaic_0001>

<bundles_post_ra>
// kernel: sinusoidal_position_embeddings.1
= control target key start
LH: loop header
LB: loop body
LE: loop exit
PB: predicated region body
PF: predicated region fallthrough
CT: control target
= control target key end

     0   :  { %v203_v0 = vmov 0   ;;  %v204_v2 = vmov 2   ;;  %v205_v3 = vmov 1   ;;  %v206_v4 = vmov 3   ;;  %s270_s0 = inlined_call_operand.vmem [shape: f32[8,4], index: 0, kind: input, shape index: {}]   ;;  %s271_s1 = inlined_call_operand.vmem [shape: f32[5,128], index: 1, kind: input, shape index: {}]   ;;  %s272_s2 = inlined_call_operand.vmem [shape: f32[8,128], index: 2, kind: output, shape index: {}]  }
   0x1   :  { %194 = vset.pattern.permute.xlu0 %v203_v0  ;;  %v12_v1 = vld [vmem:[%s270_s0] sm:$0xff]  ;;  %196 = vset.pattern.permute.xlu1 %v204_v2  ;;  %v207_v32 = vmov 683565275   ;;  %v208_v34 = vmov 2475754826  }
   0x2   :  { %16 = vperm.xlu0 %194, %v12_v1   ;;  %42 = vperm.xlu1 %196, %v12_v1   ;;  %v171_v5 = vld [vmem:[%s271_s1] ss:$0 sm:$0xff]  ;;  %v172_v9 = vld [vmem:[%s271_s1 + $0x4] ss:$0 sm:$0xff]  ;;  %v173_v10 = vld [vmem:[%s271_s1 + $0x1] ss:$0 sm:$0xff] }
   0x3   :  { %v174_v11 = vld [vmem:[%s271_s1 + $0x2] ss:$0 sm:$0xff]  ;;  %v175_v13 = vld [vmem:[%s271_s1 + $0x3] ss:$0 sm:$0xff]  ;;  %v209_v37 = vmov 2131351028  }
   0x4   :  { %v210_v40 = vmov 2102212464   ;;  %v211_v43 = vmov 920167782   ;;  %v212_v46 = vmov 1326507024  }
   0x6   :  { %195 = vset.pattern.permute.xlu0 %v205_v3  ;;  %197 = vset.pattern.permute.xlu1 %v206_v4 }
   0x7   :  { %31 = vperm.xlu0 %195, %v12_v1   ;;  %53 = vperm.xlu1 %197, %v12_v1  }
   0xb   :  { %198 = vset.pattern.permute.xlu0 %v206_v4 }
  0x81   :  { %v17_v6 = vpop.permute.xlu0 %16  ;;  %v43_v7 = vpop.permute.xlu1 %42 }
  0x82   :  { %v23_v8 = vmul.f32 %v171_v5, %v17_v6  ;;  %v49_v17 = vmul.f32 %v174_v11, %v43_v7 }
  0x84   :  { %v28_v15 = vadd.f32 %v172_v9, %v23_v8 }
  0x86   :  { %v32_v12 = vpop.permute.xlu0 %31  ;;  %v54_v14 = vpop.permute.xlu1 %53 }
  0x87   :  { %v38_v16 = vmul.f32 %v173_v10, %v32_v12  ;;  %v60_v19 = vmul.f32 %v175_v13, %v54_v14 }
  0x89   :  { %v39_v18 = vadd.f32 %v38_v16, %v28_v15 }
  0x8b   :  { %v50_v20 = vadd.f32 %v49_v17, %v39_v18 }
  0x8d   :  { %v246_v21 = vadd.f32 %v60_v19, %v50_v20 }
  0x8f   :  { %v65_v22 = vand.u32 2139095040, %v246_v21  ;;  %v62_v26 = vand.u32 2147483647, %v246_v21  ;;  %vm64_vm7 = vcmp.lt.s32.totalorder %v246_v21, 0  ;;  %vm154_vm12 = vweird.f32 %v246_v21 }
  0x91   :  { %v66_v23 = vshrl.u32 %v65_v22, 23  ;;  %v69_v29 = vand.u32 8388607, %v62_v26  ;;  %vm63_vm8 = vcmp.le.f32.partialorder %v62_v26, 0.7853982 }
  0x93   :  { %v176_v24 = vadd.s32 4294967169, %v66_v23  ;;  %v70_v48 = vor.u32 8388608, %v69_v29 }
  0x95   :  { %v72_v25 = vadd.s32 1, %v176_v24  ;;  %v110_v62 = vshll.u32 %v70_v48, 8 }
  0x97   :  { %vm73_vm0 = vcmp.gt.s32.totalorder %v72_v25, 0 }
  0x98   :  { %v74_v27 = vsel %vm73_vm0, %v72_v25, 0 }
  0x99   :  { %v76_v28 = vand.u32 31, %v74_v27  ;;  %v75_v31 = vshrl.u32 %v74_v27, 5 }
  0x9b   :  { %v77_v30 = vsub.s32 32, %v76_v28  ;;  %v79_v33 = vshll.u32 %v207_v32, %v76_v28  ;;  %v82_v35 = vshll.u32 %v208_v34, %v76_v28  ;;  %v85_v39 = vshll.u32 %v209_v37, %v76_v28 }
  0x9c   :  { %v88_v42 = vshll.u32 %v210_v40, %v76_v28  ;;  %v91_v45 = vshll.u32 %v211_v43, %v76_v28  ;;  %vm94_vm1 = vcmp.lt.s32.totalorder %v75_v31, 1  ;;  %vm97_vm2 = vcmp.lt.s32.totalorder %v75_v31, 4 }
  0x9d   :  { %v80_v36 = vshrl.u32 %v208_v34, %v77_v30  ;;  %v83_v38 = vshrl.u32 %v209_v37, %v77_v30  ;;  %v86_v41 = vshrl.u32 %v210_v40, %v77_v30  ;;  %v89_v44 = vshrl.u32 %v211_v43, %v77_v30 }
  0x9e   :  { %v92_v47 = vshrl.u32 %v212_v46, %v77_v30  ;;  %v78_v57 = vshrl.u32 %v207_v32, %v77_v30  ;;  %vm96_vm3 = vcmp.lt.s32.totalorder %v75_v31, 3  ;;  %vm95_vm4 = vcmp.lt.s32.totalorder %v75_v31, 2 }
  0x9f   :  { %v81_v49 = vor.u32 %v80_v36, %v79_v33  ;;  %v84_v50 = vor.u32 %v83_v38, %v82_v35  ;;  %v87_v51 = vor.u32 %v86_v41, %v85_v39  ;;  %v90_v52 = vor.u32 %v89_v44, %v88_v42 }
  0xa0   :  { %v93_v53 = vor.u32 %v92_v47, %v91_v45 }
  0xa1   :  { %v99_v54 = vsel %vm97_vm2, %v87_v51, 2102212464  ;;  %v102_v55 = vsel %vm94_vm1, %v81_v49, %v84_v50  ;;  %v106_v56 = vsel %vm94_vm1, %v84_v50, %v87_v51  ;;  %v103_v58 = vsel %vm97_vm2, %v90_v52, 920167782 }
  0xa2   :  { %v107_v59 = vsel %vm97_vm2, %v93_v53, 1326507024  ;;  %v104_v60 = vsel %vm96_vm3, %v87_v51, %v103_v58  ;;  %v98_v63 = vsel %vm94_vm1, %v78_v57, %v81_v49  ;;  %v100_v0 = vsel %vm96_vm3, %v84_v50, %v99_v54 }
  0xa3   :  { %v108_v61 = vsel %vm96_vm3, %v90_v52, %v107_v59  ;;  %v105_v1 = vsel %vm95_vm4, %v102_v55, %v104_v60  ;;  %v101_v7 = vsel %vm95_vm4, %v98_v63, %v100_v0 }
  0xa4   :  { %v109_v2 = vsel %vm95_vm4, %v106_v56, %v108_v61  ;;  %v255_v5 = vmul.u32.u64.low %v110_v62, %v105_v1  ;;  %v256_v6 = vmul.u32.u64.high %v110_v62, %v105_v1, %v255_v5  ;;  %v117_v9 = vmul.u32 %v110_v62, %v101_v7 }
  0xa5   :  { %v252_v3 = vmul.u32.u64.low %v110_v62, %v109_v2  ;;  %v253_v4 = vmul.u32.u64.high %v110_v62, %v109_v2, %v252_v3 }
  0xa6   :  { %v120_v8 = vadd.s32 1, %v256_v6 }
  0xa7   :  { %vm119_vm5 = vc.u32 %v253_v4, %v255_v5  ;;  %v118_v22 = vadd.s32 %v255_v5, %v253_v4 }
  0xa8   :  { %v121_v10 = vsel %vm119_vm5, %v120_v8, %v256_v6 }
  0xa9   :  { %v122_v11 = vadd.s32 %v121_v10, %v117_v9 }
  0xab   :  { %v123_v12 = vadd.s32 536870912, %v122_v11 }
  0xad   :  { %v124_v13 = vshrl.u32 %v123_v12, 30 }
  0xaf   :  { %v125_v14 = vshll.u32 %v124_v13, 30  ;;  %v148_v35 = vsub.s32 4, %v124_v13 }
  0xb1   :  { %v126_v15 = vsub.s32 %v122_v11, %v125_v14  ;;  %v149_v38 = vsel %vm64_vm7, %v148_v35, %v124_v13 }
  0xb2   :  { %v151_v40 = vsel %vm63_vm8, 0, %v149_v38 }
  0xb3   :  { %v128_v16 = vsub.s32 0, %v126_v15  ;;  %v155_v41 = vadd.s32 3, %v151_v40 }
  0xb5   :  { %v177_v17 = vmin.u32 %v128_v16, %v126_v15  ;;  %v156_v42 = vand.u32 3, %v155_v41 }
  0xb7   :  { %v130_v18 = vclz %v177_v17  ;;  %vm161_vm9 = vcmp.eq.s32.totalorder %v156_v42, 2  ;;  %vm158_vm10 = vcmp.eq.s32.totalorder %v156_v42, 0  ;;  %vm157_vm11 = vcmp.lt.s32.totalorder %v156_v42, 2 }
  0xb9   :  { %v178_v19 = vadd.s32 4294967294, %v130_v18 }
  0xbb   :  { %vm179_vm6 = vcmp.lt.s32.totalorder %v178_v19, 0 }
  0xbc   :  { %v133_v20 = vsel %vm179_vm6, 0, %v178_v19 }
  0xbd   :  { %v134_v23 = vsub.s32 32, %v133_v20  ;;  %v138_v24 = vsub.s32 4294967266, %v133_v20  ;;  %v135_v25 = vshll.u32 %v126_v15, %v133_v20 }
  0xbf   :  { %v136_v27 = vshrl.u32 %v118_v22, %v134_v23  ;;  %v139_v28 = vadd.s32 127, %v138_v24 }
  0xc1   :  { %v137_v29 = vor.u32 %v136_v27, %v135_v25  ;;  %v140_v30 = vshll.u32 %v139_v28, 23 }
  0xc3   :  { %v141_v31 = vor.u32 4788187, %v140_v30  ;;  %v144_v33 = vcvt.s32.f32 %v137_v29 }
  0xc5   :  { %v142_v32 = vand.u32 2147483647, %v141_v31 }
  0xc7   :  { %v145_v34 = vmul.f32 %v144_v33, %v142_v32 }
  0xc9   :  { %v146_v36 = vxor.u32 2147483648, %v145_v34 }
  0xcb   :  { %v147_v37 = vsel %vm64_vm7, %v146_v36, %v145_v34 }
  0xcc   :  { %v150_v39 = vsel %vm63_vm8, %v246_v21, %v147_v37 }
  0xcd   :  { %199 = vcosq.f32 %v150_v39 }
  0xce   :  { %201 = vsinq.f32 %v150_v39 }
  0xd7   :  { %v200_v43 = vpop.eup %199 }
  0xd8   :  { %v202_v44 = vpop.eup %201  ;;  %v162_v45 = vxor.u32 2147483648, %v200_v43 }
  0xd9   :  { %v159_v46 = vxor.u32 2147483648, %v202_v44 }
  0xda   :  { %v163_v47 = vsel %vm161_vm9, %v162_v45, %v202_v44 }
  0xdb   :  { %v160_v48 = vsel %vm158_vm10, %v200_v43, %v159_v46 }
  0xdc   :  { %v164_v26 = vsel %vm157_vm11, %v160_v48, %v163_v47 }
  0xdd   :  { %v165_v49 = vsel %vm154_vm12, nan, %v164_v26 }
  0xde   :  { %166 = vst [vmem:[%s272_s2] sm:$0xff] %v165_v49 }

</bundles_post_ra>
